<compile_context>
chip_gen: v7x
topology: tpu7x:2x2x1
jax: 0.10.0
libtpu: 0.0.40
codegen_flags: <defaults>
</compile_context>

<pallas_src>
import functools

import jax
import jax.numpy as jnp
from jax import lax
from jax.experimental import pallas as pl
from jax.experimental.pallas import tpu as pltpu


def _trgb_kernel(x_ref, w_ref, b_ref, o_ref, *, b_tile, c_in, ksize, h_out, w_out):
    """VPU direct convolution for one batch-tile.

    x_ref: (B_TILE, C_in, H, W)       VMEM   (lane = W, sublane = H)
    w_ref: (3 * C_in * K * K,)        SMEM   flattened OIHW weights, f32
    b_ref: (3,)                       SMEM   bias, f32
    o_ref: (B_TILE, 3, H_out, W_out)  VMEM
    """
    chans = []
    for co in range(3):                                   # C_out = 3, unrolled
        acc = jnp.zeros((b_tile, h_out, w_out), dtype=jnp.float32)
        for ci in range(c_in):                            # small C_in, unrolled
            for kh in range(ksize):
                for kw in range(ksize):
                    w_s = w_ref[((co * c_in + ci) * ksize + kh) * ksize + kw]
                    # TODO(synk): for K>1 the unaligned window slice materializes a
                    # VMEM copy per tap; a pltpu.roll-based shifted accumulation
                    # would avoid it.  For the common tRGB case (K=1) this is a
                    # full-tile load and already optimal.
                    xs = x_ref[:, ci, kh:kh + h_out, kw:kw + w_out]
                    acc = acc + w_s * xs.astype(jnp.float32)
        chans.append(acc + b_ref[co])
    # Single full-block, lane-dense store of all three channels at once.
    o_ref[...] = jnp.stack(chans, axis=1).astype(o_ref.dtype)


def trgb_forward(x_nchw, weight_oihw, bias):
    """Pallas implementation of tRGB.forward (NCHW in, NCHW out).

    x_nchw:      (N, C_in, H, W)
    weight_oihw: (3, C_in, K, K)   (PyTorch Conv2d layout)
    bias:        (3,)
    returns:     (N, 3, H-K+1, W-K+1)
    """
    n, c_in, h, w = x_nchw.shape
    out_c, c_in_w, kh_, kw_ = weight_oihw.shape
    assert out_c == 3 and c_in_w == c_in and kh_ == kw_
    k = kh_
    h_out, w_out = h - k + 1, w - k + 1

    itemsize = jnp.dtype(x_nchw.dtype).itemsize
    in_img_bytes = c_in * h * w * itemsize
    out_img_bytes = 3 * h_out * w_out * itemsize

    # Fold batch elements per grid step: aim for >= ~2 MiB moved per step while
    # keeping the double-buffered in+out footprint <= ~8 MiB (safe under the
    # scoped-VMEM limits of v5e / v6e / v7x, double buffering included).
    target_bytes = 2 * 1024 * 1024
    vmem_budget = 8 * 1024 * 1024
    b_tile = max(1, min(n, target_bytes // max(1, in_img_bytes)))
    while b_tile > 1 and 2 * b_tile * (in_img_bytes + out_img_bytes) > vmem_budget:
        b_tile //= 2
    while n % b_tile != 0:                 # keep the grid exact
        b_tile -= 1
    grid = (n // b_tile,)

    # Weights / bias as flat f32 scalar tables in SMEM (read scalar-by-scalar).
    w_flat = weight_oihw.astype(jnp.float32).reshape(-1)   # (3*C_in*K*K,)
    b_flat = bias.astype(jnp.float32).reshape(-1)          # (3,)

    kernel = functools.partial(_trgb_kernel, b_tile=b_tile, c_in=c_in,
                               ksize=k, h_out=h_out, w_out=w_out)

    flops = 2 * n * 3 * c_in * k * k * h_out * w_out
    bytes_accessed = (n * in_img_bytes + n * out_img_bytes
                      + w_flat.size * 4 + b_flat.size * 4)

    return pl.pallas_call(
        kernel,
        out_shape=jax.ShapeDtypeStruct((n, 3, h_out, w_out), x_nchw.dtype),
        grid_spec=pltpu.PrefetchScalarGridSpec(
            num_scalar_prefetch=0,
            grid=grid,
            in_specs=[
                pl.BlockSpec((b_tile, c_in, h, w), lambda i: (i, 0, 0, 0)),
                pl.BlockSpec(memory_space=pltpu.MemorySpace.SMEM),
                pl.BlockSpec(memory_space=pltpu.MemorySpace.SMEM),
            ],
            out_specs=pl.BlockSpec((b_tile, 3, h_out, w_out),
                                   lambda i: (i, 0, 0, 0)),
        ),
        compiler_params=pltpu.CompilerParams(
            dimension_semantics=("parallel",),
            vmem_limit_bytes=32 * 1024 * 1024,
        ),
        cost_estimate=pl.CostEstimate(
            flops=flops, transcendentals=0, bytes_accessed=bytes_accessed),
    )(x_nchw, w_flat, b_flat)


def _reference(x_nchw, weight_oihw, bias):
    out = lax.conv_general_dilated(
        x_nchw, weight_oihw,
        window_strides=(1, 1), padding="VALID",
        dimension_numbers=("NCHW", "OIHW", "NCHW"),
    )
    return out + bias.reshape(1, 3, 1, 1)


if __name__ == "__main__":
    key = jax.random.PRNGKey(0)
    kx, kw_, kb = jax.random.split(key, 3)

    # tRGB(input_channels=4, kernel_size=1) applied to a 16x16 feature map, batch=2.
    batch, c_in, h, w, ksize = 2, 4, 16, 16, 1
    x = jax.random.normal(kx, (batch, c_in, h, w), dtype=jnp.float32)

    # Deterministic synthetic parameters (PyTorch Conv2d shapes / init bounds).
    fan_in = c_in * ksize * ksize
    bound = 1.0 / (fan_in ** 0.5)
    weight = jax.random.uniform(kw_, (3, c_in, ksize, ksize),
                                minval=-bound, maxval=bound, dtype=jnp.float32)
    bias = jax.random.uniform(kb, (3,), minval=-bound, maxval=bound,
                              dtype=jnp.float32)

    out = trgb_forward(x, weight, bias)
    out = jax.block_until_ready(out)

    ref = _reference(x, weight, bias)
    assert out.shape == ref.shape == (batch, 3, h - ksize + 1, w - ksize + 1)
    assert jnp.allclose(out, ref, atol=1e-5, rtol=1e-5), "mismatch vs reference conv"

    print("KERNEL_OK")
</pallas_src>

<mosaic_0001>
module attributes {stable_mosaic.version = 11 : i64} {
  func.func @_trgb_kernel(%arg0: i32, %arg1: memref<2x4x16x16xf32, #tpu.memory_space<vmem>>, %arg2: memref<12xf32, #tpu.memory_space<smem>>, %arg3: memref<3xf32, #tpu.memory_space<smem>>, %arg4: memref<2x3x16x16xf32, #tpu.memory_space<vmem>>) attributes {dimension_semantics = [#tpu.dimension_semantics<parallel>], iteration_bounds = array<i64: 1>, scalar_prefetch = 0 : i64, scratch_operands = 0 : i64, tpu.core_type = #tpu.core_type<tc>, window_params = [{transform_indices = @transform_0, window_bounds = array<i64: 2, 4, 16, 16>}, {transform_indices = @transform_1, window_bounds = array<i64: 12>}, {transform_indices = @transform_2, window_bounds = array<i64: 3>}, {transform_indices = @transform_3, window_bounds = array<i64: 2, 3, 16, 16>}]} {
    %cst = arith.constant 0.000000e+00 : f32
    %0 = vector.broadcast %cst : f32 to vector<2x16x16xf32>
    %c0 = arith.constant 0 : index
    %1 = memref.load %arg2[%c0] : memref<12xf32, #tpu.memory_space<smem>>
    %c0_0 = arith.constant 0 : index
    %c0_1 = arith.constant 0 : index
    %c0_2 = arith.constant 0 : index
    %c0_3 = arith.constant 0 : index
    %2 = vector.load %arg1[%c0_0, %c0_1, %c0_2, %c0_3] : memref<2x4x16x16xf32, #tpu.memory_space<vmem>>, vector<2x1x16x16xf32>
    %3 = vector.shape_cast %2 : vector<2x1x16x16xf32> to vector<2x16x16xf32>
    %4 = vector.broadcast %1 : f32 to vector<2x16x16xf32>
    %5 = arith.mulf %4, %3 : vector<2x16x16xf32>
    %6 = arith.addf %0, %5 : vector<2x16x16xf32>
    %c1 = arith.constant 1 : index
    %7 = memref.load %arg2[%c1] : memref<12xf32, #tpu.memory_space<smem>>
    %c0_4 = arith.constant 0 : index
    %c1_5 = arith.constant 1 : index
    %c0_6 = arith.constant 0 : index
    %c0_7 = arith.constant 0 : index
    %8 = vector.load %arg1[%c0_4, %c1_5, %c0_6, %c0_7] : memref<2x4x16x16xf32, #tpu.memory_space<vmem>>, vector<2x1x16x16xf32>
    %9 = vector.shape_cast %8 : vector<2x1x16x16xf32> to vector<2x16x16xf32>
    %10 = vector.broadcast %7 : f32 to vector<2x16x16xf32>
    %11 = arith.mulf %10, %9 : vector<2x16x16xf32>
    %12 = arith.addf %6, %11 : vector<2x16x16xf32>
    %c2 = arith.constant 2 : index
    %13 = memref.load %arg2[%c2] : memref<12xf32, #tpu.memory_space<smem>>
    %c0_8 = arith.constant 0 : index
    %c2_9 = arith.constant 2 : index
    %c0_10 = arith.constant 0 : index
    %c0_11 = arith.constant 0 : index
    %14 = vector.load %arg1[%c0_8, %c2_9, %c0_10, %c0_11] : memref<2x4x16x16xf32, #tpu.memory_space<vmem>>, vector<2x1x16x16xf32>
    %15 = vector.shape_cast %14 : vector<2x1x16x16xf32> to vector<2x16x16xf32>
    %16 = vector.broadcast %13 : f32 to vector<2x16x16xf32>
    %17 = arith.mulf %16, %15 : vector<2x16x16xf32>
    %18 = arith.addf %12, %17 : vector<2x16x16xf32>
    %c3 = arith.constant 3 : index
    %19 = memref.load %arg2[%c3] : memref<12xf32, #tpu.memory_space<smem>>
    %c0_12 = arith.constant 0 : index
    %c3_13 = arith.constant 3 : index
    %c0_14 = arith.constant 0 : index
    %c0_15 = arith.constant 0 : index
    %20 = vector.load %arg1[%c0_12, %c3_13, %c0_14, %c0_15] : memref<2x4x16x16xf32, #tpu.memory_space<vmem>>, vector<2x1x16x16xf32>
    %21 = vector.shape_cast %20 : vector<2x1x16x16xf32> to vector<2x16x16xf32>
    %22 = vector.broadcast %19 : f32 to vector<2x16x16xf32>
    %23 = arith.mulf %22, %21 : vector<2x16x16xf32>
    %24 = arith.addf %18, %23 : vector<2x16x16xf32>
    %c0_16 = arith.constant 0 : index
    %25 = memref.load %arg3[%c0_16] : memref<3xf32, #tpu.memory_space<smem>>
    %26 = vector.broadcast %25 : f32 to vector<2x16x16xf32>
    %27 = arith.addf %24, %26 : vector<2x16x16xf32>
    %cst_17 = arith.constant 0.000000e+00 : f32
    %28 = vector.broadcast %cst_17 : f32 to vector<2x16x16xf32>
    %c4 = arith.constant 4 : index
    %29 = memref.load %arg2[%c4] : memref<12xf32, #tpu.memory_space<smem>>
    %c0_18 = arith.constant 0 : index
    %c0_19 = arith.constant 0 : index
    %c0_20 = arith.constant 0 : index
    %c0_21 = arith.constant 0 : index
    %30 = vector.load %arg1[%c0_18, %c0_19, %c0_20, %c0_21] : memref<2x4x16x16xf32, #tpu.memory_space<vmem>>, vector<2x1x16x16xf32>
    %31 = vector.shape_cast %30 : vector<2x1x16x16xf32> to vector<2x16x16xf32>
    %32 = vector.broadcast %29 : f32 to vector<2x16x16xf32>
    %33 = arith.mulf %32, %31 : vector<2x16x16xf32>
    %34 = arith.addf %28, %33 : vector<2x16x16xf32>
    %c5 = arith.constant 5 : index
    %35 = memref.load %arg2[%c5] : memref<12xf32, #tpu.memory_space<smem>>
    %c0_22 = arith.constant 0 : index
    %c1_23 = arith.constant 1 : index
    %c0_24 = arith.constant 0 : index
    %c0_25 = arith.constant 0 : index
    %36 = vector.load %arg1[%c0_22, %c1_23, %c0_24, %c0_25] : memref<2x4x16x16xf32, #tpu.memory_space<vmem>>, vector<2x1x16x16xf32>
    %37 = vector.shape_cast %36 : vector<2x1x16x16xf32> to vector<2x16x16xf32>
    %38 = vector.broadcast %35 : f32 to vector<2x16x16xf32>
    %39 = arith.mulf %38, %37 : vector<2x16x16xf32>
    %40 = arith.addf %34, %39 : vector<2x16x16xf32>
    %c6 = arith.constant 6 : index
    %41 = memref.load %arg2[%c6] : memref<12xf32, #tpu.memory_space<smem>>
    %c0_26 = arith.constant 0 : index
    %c2_27 = arith.constant 2 : index
    %c0_28 = arith.constant 0 : index
    %c0_29 = arith.constant 0 : index
    %42 = vector.load %arg1[%c0_26, %c2_27, %c0_28, %c0_29] : memref<2x4x16x16xf32, #tpu.memory_space<vmem>>, vector<2x1x16x16xf32>
    %43 = vector.shape_cast %42 : vector<2x1x16x16xf32> to vector<2x16x16xf32>
    %44 = vector.broadcast %41 : f32 to vector<2x16x16xf32>
    %45 = arith.mulf %44, %43 : vector<2x16x16xf32>
    %46 = arith.addf %40, %45 : vector<2x16x16xf32>
    %c7 = arith.constant 7 : index
    %47 = memref.load %arg2[%c7] : memref<12xf32, #tpu.memory_space<smem>>
    %c0_30 = arith.constant 0 : index
    %c3_31 = arith.constant 3 : index
    %c0_32 = arith.constant 0 : index
    %c0_33 = arith.constant 0 : index
    %48 = vector.load %arg1[%c0_30, %c3_31, %c0_32, %c0_33] : memref<2x4x16x16xf32, #tpu.memory_space<vmem>>, vector<2x1x16x16xf32>
    %49 = vector.shape_cast %48 : vector<2x1x16x16xf32> to vector<2x16x16xf32>
    %50 = vector.broadcast %47 : f32 to vector<2x16x16xf32>
    %51 = arith.mulf %50, %49 : vector<2x16x16xf32>
    %52 = arith.addf %46, %51 : vector<2x16x16xf32>
    %c1_34 = arith.constant 1 : index
    %53 = memref.load %arg3[%c1_34] : memref<3xf32, #tpu.memory_space<smem>>
    %54 = vector.broadcast %53 : f32 to vector<2x16x16xf32>
    %55 = arith.addf %52, %54 : vector<2x16x16xf32>
    %cst_35 = arith.constant 0.000000e+00 : f32
    %56 = vector.broadcast %cst_35 : f32 to vector<2x16x16xf32>
    %c8 = arith.constant 8 : index
    %57 = memref.load %arg2[%c8] : memref<12xf32, #tpu.memory_space<smem>>
    %c0_36 = arith.constant 0 : index
    %c0_37 = arith.constant 0 : index
    %c0_38 = arith.constant 0 : index
    %c0_39 = arith.constant 0 : index
    %58 = vector.load %arg1[%c0_36, %c0_37, %c0_38, %c0_39] : memref<2x4x16x16xf32, #tpu.memory_space<vmem>>, vector<2x1x16x16xf32>
    %59 = vector.shape_cast %58 : vector<2x1x16x16xf32> to vector<2x16x16xf32>
    %60 = vector.broadcast %57 : f32 to vector<2x16x16xf32>
    %61 = arith.mulf %60, %59 : vector<2x16x16xf32>
    %62 = arith.addf %56, %61 : vector<2x16x16xf32>
    %c9 = arith.constant 9 : index
    %63 = memref.load %arg2[%c9] : memref<12xf32, #tpu.memory_space<smem>>
    %c0_40 = arith.constant 0 : index
    %c1_41 = arith.constant 1 : index
    %c0_42 = arith.constant 0 : index
    %c0_43 = arith.constant 0 : index
    %64 = vector.load %arg1[%c0_40, %c1_41, %c0_42, %c0_43] : memref<2x4x16x16xf32, #tpu.memory_space<vmem>>, vector<2x1x16x16xf32>
    %65 = vector.shape_cast %64 : vector<2x1x16x16xf32> to vector<2x16x16xf32>
    %66 = vector.broadcast %63 : f32 to vector<2x16x16xf32>
    %67 = arith.mulf %66, %65 : vector<2x16x16xf32>
    %68 = arith.addf %62, %67 : vector<2x16x16xf32>
    %c10 = arith.constant 10 : index
    %69 = memref.load %arg2[%c10] : memref<12xf32, #tpu.memory_space<smem>>
    %c0_44 = arith.constant 0 : index
    %c2_45 = arith.constant 2 : index
    %c0_46 = arith.constant 0 : index
    %c0_47 = arith.constant 0 : index
    %70 = vector.load %arg1[%c0_44, %c2_45, %c0_46, %c0_47] : memref<2x4x16x16xf32, #tpu.memory_space<vmem>>, vector<2x1x16x16xf32>
    %71 = vector.shape_cast %70 : vector<2x1x16x16xf32> to vector<2x16x16xf32>
    %72 = vector.broadcast %69 : f32 to vector<2x16x16xf32>
    %73 = arith.mulf %72, %71 : vector<2x16x16xf32>
    %74 = arith.addf %68, %73 : vector<2x16x16xf32>
    %c11 = arith.constant 11 : index
    %75 = memref.load %arg2[%c11] : memref<12xf32, #tpu.memory_space<smem>>
    %c0_48 = arith.constant 0 : index
    %c3_49 = arith.constant 3 : index
    %c0_50 = arith.constant 0 : index
    %c0_51 = arith.constant 0 : index
    %76 = vector.load %arg1[%c0_48, %c3_49, %c0_50, %c0_51] : memref<2x4x16x16xf32, #tpu.memory_space<vmem>>, vector<2x1x16x16xf32>
    %77 = vector.shape_cast %76 : vector<2x1x16x16xf32> to vector<2x16x16xf32>
    %78 = vector.broadcast %75 : f32 to vector<2x16x16xf32>
    %79 = arith.mulf %78, %77 : vector<2x16x16xf32>
    %80 = arith.addf %74, %79 : vector<2x16x16xf32>
    %c2_52 = arith.constant 2 : index
    %81 = memref.load %arg3[%c2_52] : memref<3xf32, #tpu.memory_space<smem>>
    %82 = vector.broadcast %81 : f32 to vector<2x16x16xf32>
    %83 = arith.addf %80, %82 : vector<2x16x16xf32>
    %84 = vector.shape_cast %27 : vector<2x16x16xf32> to vector<2x1x16x16xf32>
    %85 = vector.shape_cast %55 : vector<2x16x16xf32> to vector<2x1x16x16xf32>
    %86 = vector.shape_cast %83 : vector<2x16x16xf32> to vector<2x1x16x16xf32>
    %87 = tpu.concatenate %84, %85, %86 in 1 : vector<2x1x16x16xf32>, vector<2x1x16x16xf32>, vector<2x1x16x16xf32> -> vector<2x3x16x16xf32>
    %c0_53 = arith.constant 0 : index
    %c0_54 = arith.constant 0 : index
    %c0_55 = arith.constant 0 : index
    %c0_56 = arith.constant 0 : index
    %88 = vector.load %arg4[%c0_53, %c0_54, %c0_55, %c0_56] : memref<2x3x16x16xf32, #tpu.memory_space<vmem>>, vector<2x3x16x16xf32>
    tpu.vector_store %arg4[%c0_53, %c0_54, %c0_55, %c0_56], %87 {strides = array<i32>} : memref<2x3x16x16xf32, #tpu.memory_space<vmem>>, vector<2x3x16x16xf32>,
    return
  }
  func.func @transform_0(%arg0: i32) -> (i32, i32, i32, i32) {
    %c0_i32 = arith.constant 0 : i32
    %c0_i32_0 = arith.constant 0 : i32
    %c0_i32_1 = arith.constant 0 : i32
    %c0_i32_2 = arith.constant 0 : i32
    return %arg0, %c0_i32, %c0_i32_0, %c0_i32_1 : i32, i32, i32, i32
  }
  func.func @transform_1(%arg0: i32) -> i32 {
    %c0_i32 = arith.constant 0 : i32
    %c0_i32_0 = arith.constant 0 : i32
    return %c0_i32 : i32
  }
  func.func @transform_2(%arg0: i32) -> i32 {
    %c0_i32 = arith.constant 0 : i32
    %c0_i32_0 = arith.constant 0 : i32
    return %c0_i32 : i32
  }
  func.func @transform_3(%arg0: i32) -> (i32, i32, i32, i32) {
    %c0_i32 = arith.constant 0 : i32
    %c0_i32_0 = arith.constant 0 : i32
    %c0_i32_1 = arith.constant 0 : i32
    %c0_i32_2 = arith.constant 0 : i32
    return %arg0, %c0_i32, %c0_i32_0, %c0_i32_1 : i32, i32, i32, i32
  }
}

</mosaic_0001>

<bundles_post_ra>
// kernel: tpu_custom_call.1
= control target key start
LH: loop header
LB: loop body
LE: loop exit
PB: predicated region body
PF: predicated region fallthrough
CT: control target
= control target key end

     0   :  { %8 = vsyncpa [#allocation3], 0  ;;  %s546_s0 = inlined_call_operand.hbm [shape: f32[2,4,16,16], index: 0, kind: input, shape index: {}]   ;;  %s547_s1 = inlined_call_operand.vmem [shape: f32[12], index: 1, kind: input, shape index: {}]   ;;  %s548_s2 = inlined_call_operand.vmem [shape: f32[3], index: 2, kind: input, shape index: {}]   ;;  %s549_s3 = inlined_call_operand.hbm [shape: f32[2,3,16,16], index: 3, kind: output, shape index: {}]  }
   0x1   :  { %9 = vsyncpa [#allocation5], 0 }
   0x2   :  { %10 = vsyncpa [#allocation8], 0 }
   0x3   :  { %11 = vsyncpa [#allocation4], 0  ;;  %s338_s12 = smov [#allocation2]   ;;  %s30_s16 = sshll.u32 %s547_s1, 4  ;;  %s31_s16 = int_to_ptr.vmem [resolvable:$true] %s30_s16 }
   0x4   :  { %s17_s13 = sshll.u32 %s338_s12, 4  ;;  %s262_s19 = scalar_lea.hbm %s546_s0, 2048  ;;  %s18_s13 = int_to_ptr.vmem [resolvable:$true] %s17_s13 }
   0x5   :  { %p263_p0 = scmp.ne.s32.totalorder %s546_s0, %s262_s19  ;;  %p266_p1 = scmp.lt.u32.totalorder %s262_s19, %s546_s0 }
   0x7   :  { %p268_p2 = pnand %p266_p1, %p263_p0 }
   0x9   :  { %271 = shalt.err (!%p268_p2)
}
   0xa   :  { %s272_s24 = scalar_lea.vmem %s18_s13, 2048  ;;  %p277_p4 = scmp.lt.s32.totalorder %s18_s13, %s18_s13 }
   0xb   :  { %p273_p3 = scmp.ne.s32.totalorder %s18_s13, %s272_s24  ;;  %p278_p5 = scmp.lt.s32.totalorder %s272_s24, %s272_s24 }
   0xd   :  { %p279_p6 = por %p278_p5, %p277_p4 }
   0xf   :  { %p280_p7 = pnand %p279_p6, %p273_p3 }
  0x11   :  { %283 = shalt.err (!%p280_p7)
}
  0x12   :  { %s339_s1 = smov 128   ;;  %s340_s25 = smov 8  }
  0x13   :  { %23 = dma.hbm_to_vmem [thread:$0]  %s546_s0, 2048, %s18_s13, [#allocation3], %s339_s1, %s339_s1, %s340_s25  }
  0x14   :  { %s284_s28 = scalar_lea.vmem %s31_s16, 16  ;;  %p289_p9 = scmp.lt.s32.totalorder %s31_s16, %s31_s16 }
  0x15   :  { %p285_p8 = scmp.ne.s32.totalorder %s31_s16, %s284_s28  ;;  %p290_p10 = scmp.lt.s32.totalorder %s284_s28, %s284_s28 }
  0x17   :  { %p291_p11 = por %p290_p10, %p289_p9 }
  0x19   :  { %p292_p12 = pnand %p291_p11, %p285_p8 }
  0x1b   :  { %295 = shalt.err (!%p292_p12)
}
  0x1c   :  { %s341_s29 = smov [#allocation6]   ;;  %s40_s5 = sshll.u32 %s548_s2, 4  ;;  %s41_s5 = int_to_ptr.vmem [resolvable:$true] %s40_s5 }
  0x1d   :  { %33 = dma.vmem_to_smem %s31_s16, 16, %s341_s29, [#allocation5]  }
  0x1e   :  { %s296_s6 = scalar_lea.vmem %s41_s5, 16  ;;  %p301_p0 = scmp.lt.s32.totalorder %s41_s5, %s41_s5 }
  0x1f   :  { %p297_p13 = scmp.ne.s32.totalorder %s41_s5, %s296_s6  ;;  %p302_p1 = scmp.lt.s32.totalorder %s296_s6, %s296_s6 }
  0x21   :  { %p303_p2 = por %p302_p1, %p301_p0 }
  0x23   :  { %p304_p3 = pnand %p303_p2, %p297_p13 }
  0x25   :  { %307 = shalt.err (!%p304_p3)
}
  0x26   :  { %s342_s0 = smov [#allocation7]  }
  0x27   :  { %43 = dma.vmem_to_smem %s41_s5, 16, %s342_s0, [#allocation8]  }
  0x28   :  { %330 = dma.done.wait [#allocation3], 2048  }
  0x29   :  { %331 = vsyncadd [#allocation3], 4294965248 }
  0x2a   :  { %332 = dma.done.wait [#allocation5], 16  }
  0x2b   :  { %333 = vsyncadd [#allocation5], 4294967280 }
  0x2c   :  { %334 = dma.done.wait [#allocation8], 16  }
  0x2d   :  { %335 = vsyncadd [#allocation8], 4294967280 }
  0x2e   :  { %53 = sfence }
  0x2f   :  { %s54_s7 = sld [smem:[#allocation6]]  ;;  %s243_s8 = sld [smem:[#allocation6 + $0x1]]  ;;  %v55_v0 = vld [vmem:[#allocation2] sm:$0xff]  ;;  %v70_v1 = vld [vmem:[#allocation2 + $0x10] sm:$0xff]  ;;  %v389_v4 = vld [vmem:[#allocation2 + $0x8] sm:$0xff]  ;;  %vm211_vm0 = vcmask 130048  }
  0x30   :  { %s244_s2 = sld [smem:[#allocation6 + $0x2]]  ;;  %s245_s9 = sld [smem:[#allocation6 + $0x3]]  ;;  %v85_v2 = vld [vmem:[#allocation2 + $0x20] sm:$0xff]  ;;  %v100_v3 = vld [vmem:[#allocation2 + $0x30] sm:$0xff]  ;;  %v391_v5 = vld [vmem:[#allocation2 + $0x18] sm:$0xff] }
  0x31   :  { %s113_s10 = sld [smem:[#allocation7]]  ;;  %s385_s11 = sld [smem:[#allocation6 + $0x4]]  ;;  %v399_v8 = vld [vmem:[#allocation2 + $0x28] sm:$0xff]  ;;  %v401_v9 = vld [vmem:[#allocation2 + $0x38] sm:$0xff]  ;;  %v57_v54 = vld [vmem:[#allocation2 + $0x40] sm:$0xff] }
  0x32   :  { %s387_s12 = sld [smem:[#allocation6 + $0x5]]  ;;  %s248_s13 = sld [smem:[#allocation6 + $0x6]]  ;;  %v72_v55 = vld [vmem:[#allocation2 + $0x50] sm:$0xff]  ;;  %v87_v60 = vld [vmem:[#allocation2 + $0x60] sm:$0xff] }
  0x33   :  { %s249_s14 = sld [smem:[#allocation6 + $0x7]]  ;;  %s393_s15 = sld [smem:[#allocation7 + $0x1]]  ;;  %v102_v61 = vld [vmem:[#allocation2 + $0x70] sm:$0xff] }
  0x34   :  { %s403_s16 = sld [smem:[#allocation6 + $0x8]]  ;;  %s405_s17 = sld [smem:[#allocation6 + $0x9]] }
  0x35   :  { %v395_v6 = vstv %s54_s7  ;;  %v397_v7 = vstv %s243_s8  ;;  %s419_s18 = sld [smem:[#allocation6 + $0xa]]  ;;  %s421_s19 = sld [smem:[#allocation6 + $0xb]] }
  0x36   :  { %v60_v10 = vmul.f32 %v395_v6, %v55_v0  ;;  %v75_v11 = vmul.f32 %v397_v7, %v70_v1  ;;  %v409_v12 = vstv %s244_s2  ;;  %v411_v13 = vstv %s245_s9  ;;  %s439_s20 = sld [smem:[#allocation7 + $0x2]]  ;;  %s343_s21 = smov [#allocation9]  }
  0x37   :  { %v90_v14 = vmul.f32 %v409_v12, %v85_v2  ;;  %v105_v15 = vmul.f32 %v411_v13, %v100_v3  ;;  %v415_v16 = vstv %s113_s10  ;;  %v61_v17 = vmul.f32 %v395_v6, %v389_v4  ;;  %s229_s22 = sshll.u32 %s343_s21, 4  ;;  %s230_s22 = int_to_ptr.vmem [resolvable:$true] %s229_s22 }
  0x38   :  { %v79_v18 = vadd.f32 %v75_v11, %v60_v10  ;;  %v76_v19 = vmul.f32 %v397_v7, %v391_v5  ;;  %v91_v20 = vmul.f32 %v409_v12, %v399_v8  ;;  %v106_v21 = vmul.f32 %v411_v13, %v401_v9  ;;  %s308_s23 = scalar_lea.vmem %s230_s22, 1536  ;;  %p313_p5 = scmp.lt.s32.totalorder %s230_s22, %s230_s22 }
  0x39   :  { %v430_v22 = vstv %s385_s11  ;;  %v433_v23 = vstv %s387_s12  ;;  %v435_v24 = vstv %s248_s13  ;;  %v437_v25 = vstv %s249_s14  ;;  %p309_p4 = scmp.ne.s32.totalorder %s230_s22, %s308_s23  ;;  %p314_p6 = scmp.lt.s32.totalorder %s308_s23, %s308_s23 }
  0x3a   :  { %v94_v26 = vadd.f32 %v90_v14, %v79_v18  ;;  %v80_v27 = vadd.f32 %v76_v19, %v61_v17  ;;  %v121_v28 = vmul.f32 %v430_v22, %v55_v0  ;;  %v131_v29 = vmul.f32 %v433_v23, %v70_v1  ;;  %v103_v17 = vld [vmem:[#allocation2 + $0x78] sm:$0xff] }
  0x3b   :  { %v141_v30 = vmul.f32 %v435_v24, %v85_v2  ;;  %v151_v31 = vmul.f32 %v437_v25, %v100_v3  ;;  %v446_v32 = vstv %s393_s15  ;;  %v122_v33 = vmul.f32 %v430_v22, %v389_v4  ;;  %p315_p7 = por %p314_p6, %p313_p5 }
  0x3c   :  { %v109_v34 = vadd.f32 %v105_v15, %v94_v26  ;;  %v95_v35 = vadd.f32 %v91_v20, %v80_v27  ;;  %v135_v36 = vadd.f32 %v131_v29, %v121_v28  ;;  %v132_v37 = vmul.f32 %v433_v23, %v391_v5  ;;  %v88_v15 = vld [vmem:[#allocation2 + $0x68] sm:$0xff] }
  0x3d   :  { %v142_v38 = vmul.f32 %v435_v24, %v399_v8  ;;  %v152_v39 = vmul.f32 %v437_v25, %v401_v9  ;;  %v457_v40 = vstv %s403_s16  ;;  %v460_v41 = vstv %s405_s17  ;;  %p316_p8 = pnand %p315_p7, %p309_p4 }
  0x3e   :  { %v115_v42 = vadd.f32 %v415_v16, %v109_v34  ;;  %v110_v43 = vadd.f32 %v106_v21, %v95_v35  ;;  %v145_v44 = vadd.f32 %v141_v30, %v135_v36  ;;  %v136_v45 = vadd.f32 %v132_v37, %v122_v33 }
  0x3f   :  { %v167_v46 = vmul.f32 %v457_v40, %v55_v0  ;;  %v177_v47 = vmul.f32 %v460_v41, %v70_v1  ;;  %v466_v48 = vstv %s419_s18  ;;  %v469_v49 = vstv %s421_s19 }
  0x40   :  { %212 = vst.msk [vmem:[#allocation9] sm:$0xff] %vm211_vm0, %v115_v42  ;;  %v116_v50 = vadd.f32 %v415_v16, %v110_v43  ;;  %v155_v51 = vadd.f32 %v151_v31, %v145_v44  ;;  %v146_v52 = vadd.f32 %v142_v38, %v136_v45  ;;  %v187_v53 = vmul.f32 %v466_v48, %v85_v2  ;;  %v58_v2 = vld [vmem:[#allocation2 + $0x48] sm:$0xff] }
  0x41   :  { %v181_v56 = vadd.f32 %v177_v47, %v167_v46  ;;  %v197_v57 = vmul.f32 %v469_v49, %v100_v3  ;;  %v476_v58 = vstv %s439_s20  ;;  %v168_v59 = vmul.f32 %v457_v40, %v389_v4  ;;  %v73_v3 = vld [vmem:[#allocation2 + $0x58] sm:$0xff] }
  0x42   :  { %213 = vst.msk [vmem:[#allocation9 + $0x8] sm:$0xff] %vm211_vm0, %v116_v50  ;;  %v161_v62 = vadd.f32 %v446_v32, %v155_v51  ;;  %v156_v63 = vadd.f32 %v152_v39, %v146_v52  ;;  %v178_v0 = vmul.f32 %v460_v41, %v391_v5  ;;  %v188_v1 = vmul.f32 %v466_v48, %v399_v8 }
  0x43   :  { %v191_v10 = vadd.f32 %v187_v53, %v181_v56  ;;  %v198_v11 = vmul.f32 %v469_v49, %v401_v9  ;;  %v62_v4 = vmul.f32 %v395_v6, %v57_v54  ;;  %v77_v14 = vmul.f32 %v397_v7, %v72_v55 }
  0x44   :  { %214 = vst.msk [vmem:[#allocation9 + $0x10] sm:$0xff] %vm211_vm0, %v161_v62  ;;  %v162_v18 = vadd.f32 %v446_v32, %v156_v63  ;;  %v182_v5 = vadd.f32 %v178_v0, %v168_v59  ;;  %v92_v19 = vmul.f32 %v409_v12, %v87_v60  ;;  %v107_v8 = vmul.f32 %v411_v13, %v102_v61 }
  0x45   :  { %v201_v20 = vadd.f32 %v197_v57, %v191_v10  ;;  %v81_v21 = vadd.f32 %v77_v14, %v62_v4  ;;  %v63_v26 = vmul.f32 %v395_v6, %v58_v2  ;;  %v78_v9 = vmul.f32 %v397_v7, %v73_v3 }
  0x46   :  { %215 = vst.msk [vmem:[#allocation9 + $0x18] sm:$0xff] %vm211_vm0, %v162_v18  ;;  %v192_v27 = vadd.f32 %v188_v1, %v182_v5  ;;  %v93_v28 = vmul.f32 %v409_v12, %v88_v15  ;;  %v108_v29 = vmul.f32 %v411_v13, %v103_v17  ;;  %v123_v30 = vmul.f32 %v430_v22, %v57_v54 }
  0x47   :  { %v207_v31 = vadd.f32 %v476_v58, %v201_v20  ;;  %v96_v33 = vadd.f32 %v92_v19, %v81_v21  ;;  %v82_v34 = vadd.f32 %v78_v9, %v63_v26  ;;  %v133_v35 = vmul.f32 %v433_v23, %v72_v55 }
  0x48   :  { %v202_v36 = vadd.f32 %v198_v11, %v192_v27  ;;  %v143_v6 = vmul.f32 %v435_v24, %v87_v60  ;;  %v153_v7 = vmul.f32 %v437_v25, %v102_v61  ;;  %v124_v37 = vmul.f32 %v430_v22, %v58_v2 }
  0x49   :  { %216 = vst.msk [vmem:[#allocation9 + $0x20] sm:$0xff] %vm211_vm0, %v207_v31  ;;  %v111_v12 = vadd.f32 %v107_v8, %v96_v33  ;;  %v97_v38 = vadd.f32 %v93_v28, %v82_v34  ;;  %v137_v13 = vadd.f32 %v133_v35, %v123_v30  ;;  %v134_v39 = vmul.f32 %v433_v23, %v73_v3 }
  0x4a   :  { %v208_v42 = vadd.f32 %v476_v58, %v202_v36  ;;  %v144_v43 = vmul.f32 %v435_v24, %v88_v15  ;;  %v154_v44 = vmul.f32 %v437_v25, %v103_v17  ;;  %v169_v45 = vmul.f32 %v457_v40, %v57_v54 }
  0x4b   :  { %v117_v46 = vadd.f32 %v415_v16, %v111_v12  ;;  %v112_v47 = vadd.f32 %v108_v29, %v97_v38  ;;  %v147_v50 = vadd.f32 %v143_v6, %v137_v13  ;;  %v138_v22 = vadd.f32 %v134_v39, %v124_v37 }
  0x4c   :  { %217 = vst.msk [vmem:[#allocation9 + $0x28] sm:$0xff] %vm211_vm0, %v208_v42  ;;  %v179_v51 = vmul.f32 %v460_v41, %v72_v55  ;;  %v189_v52 = vmul.f32 %v466_v48, %v87_v60  ;;  %v170_v23 = vmul.f32 %v457_v40, %v58_v2  ;;  %v180_v54 = vmul.f32 %v460_v41, %v73_v3 }
  0x4d   :  { %218 = vst.msk [vmem:[#allocation9 + $0x30] sm:$0xff] %vm211_vm0, %v117_v46  ;;  %v118_v24 = vadd.f32 %v415_v16, %v112_v47  ;;  %v157_v25 = vadd.f32 %v153_v7, %v147_v50  ;;  %v148_v53 = vadd.f32 %v144_v43, %v138_v22  ;;  %v199_v57 = vmul.f32 %v469_v49, %v102_v61 }
  0x4e   :  { %v183_v56 = vadd.f32 %v179_v51, %v169_v45  ;;  %v190_v59 = vmul.f32 %v466_v48, %v88_v15  ;;  %v184_v62 = vadd.f32 %v180_v54, %v170_v23  ;;  %v200_v40 = vmul.f32 %v469_v49, %v103_v17 }
  0x4f   :  { %219 = vst.msk [vmem:[#allocation9 + $0x38] sm:$0xff] %vm211_vm0, %v118_v24  ;;  %v163_v55 = vadd.f32 %v446_v32, %v157_v25  ;;  %v158_v60 = vadd.f32 %v154_v44, %v148_v53 }
  0x50   :  { %v193_v63 = vadd.f32 %v189_v52, %v183_v56  ;;  %v194_v0 = vadd.f32 %v190_v59, %v184_v62 }
  0x51   :  { %220 = vst.msk [vmem:[#allocation9 + $0x40] sm:$0xff] %vm211_vm0, %v163_v55  ;;  %v164_v16 = vadd.f32 %v446_v32, %v158_v60 }
  0x52   :  { %v203_v41 = vadd.f32 %v199_v57, %v193_v63  ;;  %v204_v48 = vadd.f32 %v200_v40, %v194_v0 }
  0x53   :  { %221 = vst.msk [vmem:[#allocation9 + $0x48] sm:$0xff] %vm211_vm0, %v164_v16 }
  0x54   :  { %v209_v61 = vadd.f32 %v476_v58, %v203_v41  ;;  %v210_v1 = vadd.f32 %v476_v58, %v204_v48 }
  0x56   :  { %222 = vst.msk [vmem:[#allocation9 + $0x50] sm:$0xff] %vm211_vm0, %v209_v61  ;;  %223 = vst.msk [vmem:[#allocation9 + $0x58] sm:$0xff] %vm211_vm0, %v210_v1 }
  0x57   :  { %319 = shalt.err (!%p316_p8)
}
  0x58   :  { %s320_s27 = scalar_lea.hbm %s549_s3, 1536 }
  0x59   :  { %p321_p9 = scmp.ne.s32.totalorder %s549_s3, %s320_s27  ;;  %p324_p10 = scmp.lt.u32.totalorder %s320_s27, %s549_s3 }
  0x5b   :  { %p326_p11 = pnand %p324_p10, %p321_p9 }
  0x5d   :  { %329 = shalt.err (!%p326_p11)
}
  0x5e   :  { %235 = dma.vmem_to_hbm [thread:$0]  %s230_s22, 1536, %s549_s3, [#allocation4], %s339_s1, %s339_s1, %s340_s25  }
  0x5f   :  { %336 = dma.done.wait [#allocation4], 1536  }
  0x60   :  { %337 = vsyncadd [#allocation4], 4294965760 }
  0x61   :  { %239 = vsyncpa [#allocation3], 1 }
  0x62   :  { %240 = vsyncpa [#allocation4], 1 }
  0x63   :  { %241 = vsyncpa [#allocation5], 1 }
  0x64   :  { %242 = vsyncpa [#allocation8], 1 }

</bundles_post_ra>
